<compile_context>
chip_gen: v5e
topology: v5e:2x2
jax: 0.10.0
libtpu: 0.0.40
codegen_flags: <defaults>
</compile_context>

<pallas_src>
import functools

import jax
import jax.numpy as jnp
from jax.experimental import pallas as pl
from jax.experimental.pallas import tpu as pltpu

ALPHA = 0.25
GAMMA = 2.0
LANES = 128
MAX_TILE_ROWS = 4096        # (4096,128) f32 block = 2 MiB / input / buffer
NUM_PARTIALS = 2            # leading "parallel" grid axis (2 TensorCores on v7x)


def _round_up(x, m):
    return ((x + m - 1) // m) * m


def _cdiv(a, b):
    return -(-a // b)


def _focal_sum(p, t, gamma, hard_targets):
    """Plain-JAX focal-loss SUM (alpha excluded) — used only for the <128-elem tail."""
    p = p.astype(jnp.float32)
    t = t.astype(jnp.float32)
    if hard_targets:
        pt = jnp.where(t >= 0.5, p, 1.0 - p)
        bce = -jnp.maximum(jnp.log(pt), -100.0)
    else:
        log_p = jnp.maximum(jnp.log(p), -100.0)
        log_1mp = jnp.maximum(jnp.log(1.0 - p), -100.0)
        bce = -(t * log_p + (1.0 - t) * log_1mp)
        pt = jnp.exp(-bce)
    return jnp.sum((1.0 - pt) ** gamma * bce)


def _focal_loss_kernel(x_ref, t_ref, o_ref, *, gamma, hard_targets,
                       rows, tile_rows, tiles_per_partial, need_mask):
    c = pl.program_id(0)
    i = pl.program_id(1)

    # Output block is VMEM-resident across the "arbitrary" axis: zero at i==0,
    # accumulate every step, no scratch / final copy needed.
    @pl.when(i == 0)
    def _():
        o_ref[...] = jnp.zeros_like(o_ref)

    p = x_ref[...].astype(jnp.float32)
    t = t_ref[...].astype(jnp.float32)

    if hard_targets:
        # 1 transcendental / element.  Exact for targets in {0, 1}.
        pt = jnp.where(t >= 0.5, p, 1.0 - p)
        bce = -jnp.maximum(jnp.log(pt), -100.0)       # PyTorch BCE log-clamp
    else:
        # Faithful soft-target path: the exact PyTorch math (2 logs + exp).
        log_p = jnp.maximum(jnp.log(p), -100.0)
        log_1mp = jnp.maximum(jnp.log(1.0 - p), -100.0)
        bce = -(t * log_p + (1.0 - t) * log_1mp)
        pt = jnp.exp(-bce)

    omp = 1.0 - pt
    if gamma == 2.0:
        mod = omp * omp                    # strength-reduced: no pow on the EUP
    elif float(gamma) == int(gamma) and gamma >= 0.0:
        mod = omp ** int(gamma)            # integer_pow -> repeated multiplies
    else:
        mod = omp ** gamma                 # general float pow
    f_loss = mod * bce                     # alpha folded into the wrapper epilogue

    if need_mask:
        # Ragged tail / over-provisioned grid steps: out-of-bounds rows hold
        # undefined data after the edge DMA; zero their contribution.
        row0 = (c * tiles_per_partial + i) * tile_rows
        row_ids = row0 + jax.lax.broadcasted_iota(jnp.int32, f_loss.shape, 0)
        f_loss = jnp.where(row_ids < rows, f_loss, 0.0)

    # VPU-only accumulation into the vreg-shaped (8, 128) output slab; the one
    # cross-lane reduce happens once in the wrapper over num_partials*8*128 floats.
    o_ref[...] += f_loss.reshape(-1, 8, LANES).sum(axis=0)


def focal_loss(inputs, targets, alpha=ALPHA, gamma=GAMMA, hard_targets=True):
    """FocalLoss(alpha, gamma, logits=False, reduce=True) forward.

    `inputs` are probabilities, `targets` are labels.  With hard_targets=True
    (default) a 1-transcendental fast path is used (exact for targets in
    {0, 1}); pass hard_targets=False for soft/float targets (faithful
    2-log + exp PyTorch math).  bf16 inputs are accepted and upcast in-kernel.
    """
    assert inputs.shape == targets.shape
    total = inputs.size
    gamma = float(gamma)

    flat_x = inputs.reshape(-1)
    flat_t = targets.reshape(-1)

    rows = total // LANES
    tail = total - rows * LANES

    # Remainder smaller than one lane row (< 128 elements) is computed in plain
    # JAX so the kernel only ever sees a zero-copy (rows, 128) reshape — no
    # concatenate / pad pass over the inputs in HBM.
    tail_sum = jnp.float32(0.0)
    if tail:
        tail_sum = _focal_sum(flat_x[rows * LANES:], flat_t[rows * LANES:],
                              gamma, hard_targets)
        flat_x = flat_x[: rows * LANES]
        flat_t = flat_t[: rows * LANES]

    if rows == 0:                       # tiny input: everything fit in the tail
        return (alpha * tail_sum) / jnp.float32(total)

    x2d = flat_x.reshape(rows, LANES)
    t2d = flat_t.reshape(rows, LANES)

    # Multiple of 16 keeps bf16 sublane packing happy; also multiple of 8 for f32.
    tile_rows = min(MAX_TILE_ROWS, _round_up(rows, 16))
    tiles_total = _cdiv(rows, tile_rows)
    num_partials = min(NUM_PARTIALS, tiles_total)
    tiles_per_partial = _cdiv(tiles_total, num_partials)
    need_mask = (num_partials * tiles_per_partial * tile_rows) != rows

    if num_partials * tiles_per_partial > tiles_total:
        # Some grid steps are entirely out of bounds: clamp their block index
        # (their contribution is masked to zero inside the kernel).
        def _in_map(c, i, _t=tiles_per_partial, _last=tiles_total - 1):
            return (jnp.minimum(c * _t + i, _last), 0)
    else:
        def _in_map(c, i, _t=tiles_per_partial):
            return (c * _t + i, 0)

    kernel = functools.partial(
        _focal_loss_kernel,
        gamma=gamma, hard_targets=bool(hard_targets),
        rows=rows, tile_rows=tile_rows, tiles_per_partial=tiles_per_partial,
        need_mask=need_mask,
    )

    in_bytes = x2d.size * x2d.dtype.itemsize + t2d.size * t2d.dtype.itemsize
    cost = pl.CostEstimate(
        flops=10 * rows * LANES,
        transcendentals=(1 if hard_targets else 3) * rows * LANES,
        bytes_accessed=in_bytes + num_partials * 8 * LANES * 4,
    )

    partials = pl.pallas_call(
        kernel,
        out_shape=jax.ShapeDtypeStruct((num_partials, 8, LANES), jnp.float32),
        grid_spec=pltpu.PrefetchScalarGridSpec(
            num_scalar_prefetch=0,
            grid=(num_partials, tiles_per_partial),
            in_specs=[
                pl.BlockSpec((tile_rows, LANES), _in_map),
                pl.BlockSpec((tile_rows, LANES), _in_map),
            ],
            out_specs=pl.BlockSpec((None, 8, LANES), lambda c, i: (c, 0, 0)),
        ),
        # TODO(synk): on v7x verify the leading axis really splits across the two
        # TensorCores (check MLIR / bundles); if not, switch it to
        # pltpu.CORE_PARALLEL or restructure with pl.core_map.
        compiler_params=pltpu.CompilerParams(
            dimension_semantics=("parallel", "arbitrary"),
            vmem_limit_bytes=32 * 1024 * 1024,
        ),
        cost_estimate=cost,
    )(x2d, t2d)

    # Single tiny epilogue: cross-partial/cross-lane reduce, alpha applied once,
    # divide by the TRUE element count.
    return (alpha * (jnp.sum(partials) + tail_sum)) / jnp.float32(total)


if __name__ == "__main__":
    key = jax.random.PRNGKey(0)
    k1, k2 = jax.random.split(key)

    # Inputs consistent with FocalLoss(logits=False): probabilities + {0,1} targets.
    # NCHW example shape (2, 4, 16, 16) -> 2048 elements.
    x = jax.nn.sigmoid(jax.random.normal(k1, (2, 4, 16, 16), jnp.float32))
    y = jax.random.bernoulli(k2, 0.5, (2, 4, 16, 16)).astype(jnp.float32)

    # Pure-JAX reference (exactly the PyTorch module's math).
    log_p = jnp.maximum(jnp.log(x), -100.0)
    log_1mp = jnp.maximum(jnp.log(1.0 - x), -100.0)
    bce = -(y * log_p + (1.0 - y) * log_1mp)
    pt = jnp.exp(-bce)
    ref = jnp.mean(ALPHA * (1.0 - pt) ** GAMMA * bce)

    # Fast hard-target path (default).
    loss = jax.block_until_ready(focal_loss(x, y))
    assert jnp.allclose(loss, ref, rtol=1e-5, atol=1e-6), (loss, ref)

    # Exact soft-target-safe path.
    loss_exact = jax.block_until_ready(focal_loss(x, y, hard_targets=False))
    assert jnp.allclose(loss_exact, ref, rtol=1e-5, atol=1e-6), (loss_exact, ref)

    # bf16 inputs also stream through the same kernel (half the HBM bytes).
    xb = x.astype(jnp.bfloat16)
    yb = y.astype(jnp.bfloat16)
    loss_bf16 = jax.block_until_ready(focal_loss(xb, yb))
    pb = xb.astype(jnp.float32)
    tb = yb.astype(jnp.float32)
    log_pb = jnp.maximum(jnp.log(pb), -100.0)
    log_1mpb = jnp.maximum(jnp.log(1.0 - pb), -100.0)
    bceb = -(tb * log_pb + (1.0 - tb) * log_1mpb)
    refb = jnp.mean(ALPHA * (1.0 - jnp.exp(-bceb)) ** GAMMA * bceb)
    assert jnp.allclose(loss_bf16, refb, rtol=1e-3, atol=1e-4), (loss_bf16, refb)

    print("KERNEL_OK")
</pallas_src>

<mosaic_0001>
module attributes {stable_mosaic.version = 11 : i64} {
  func.func @_focal_loss_kernel(%arg0: i32, %arg1: i32, %arg2: memref<16x128xf32, #tpu.memory_space<vmem>>, %arg3: memref<16x128xf32, #tpu.memory_space<vmem>>, %arg4: memref<1x8x128xf32, #tpu.memory_space<vmem>>) attributes {dimension_semantics = [#tpu.dimension_semantics<parallel>, #tpu.dimension_semantics<arbitrary>], iteration_bounds = array<i64: 1, 1>, scalar_prefetch = 0 : i64, scratch_operands = 0 : i64, tpu.core_type = #tpu.core_type<tc>, window_params = [{transform_indices = @transform_0, window_bounds = array<i64: 16, 128>}, {transform_indices = @transform_1, window_bounds = array<i64: 16, 128>}, {transform_indices = @transform_2, window_bounds = array<i64: 1, 8, 128>}]} {
    %c0_i32 = arith.constant 0 : i32
    %0 = arith.cmpi eq, %arg1, %c0_i32 : i32
    %1 = arith.extui %0 : i1 to i32
    %c0_i32_0 = arith.constant 0 : i32
    %2 = arith.cmpi ne, %1, %c0_i32_0 : i32
    scf.if %2 {
      %cst_15 = arith.constant 0.000000e+00 : f32
      %27 = vector.broadcast %cst_15 : f32 to vector<8x128xf32>
      %c0_16 = arith.constant 0 : index
      %c0_17 = arith.constant 0 : index
      %c0_18 = arith.constant 0 : index
      %28 = vector.load %arg4[%c0_16, %c0_17, %c0_18] : memref<1x8x128xf32, #tpu.memory_space<vmem>>, vector<1x8x128xf32>
      %29 = vector.shape_cast %28 : vector<1x8x128xf32> to vector<8x128xf32>
      %30 = vector.shape_cast %27 : vector<8x128xf32> to vector<1x8x128xf32>
      tpu.vector_store %arg4[%c0_16, %c0_17, %c0_18], %30 {strides = array<i32>} : memref<1x8x128xf32, #tpu.memory_space<vmem>>, vector<1x8x128xf32>,
    } else {
    }
    %c0 = arith.constant 0 : index
    %c0_1 = arith.constant 0 : index
    %3 = vector.load %arg2[%c0, %c0_1] : memref<16x128xf32, #tpu.memory_space<vmem>>, vector<16x128xf32>
    %c0_2 = arith.constant 0 : index
    %c0_3 = arith.constant 0 : index
    %4 = vector.load %arg3[%c0_2, %c0_3] : memref<16x128xf32, #tpu.memory_space<vmem>>, vector<16x128xf32>
    %cst = arith.constant 5.000000e-01 : f32
    %5 = vector.broadcast %cst : f32 to vector<16x128xf32>
    %6 = arith.cmpf oge, %4, %5 : vector<16x128xf32>
    %cst_4 = arith.constant 1.000000e+00 : f32
    %7 = vector.broadcast %cst_4 : f32 to vector<16x128xf32>
    %8 = arith.subf %7, %3 : vector<16x128xf32>
    %9 = arith.select %6, %3, %8 : vector<16x128xi1>, vector<16x128xf32>
    %10 = math.log %9 : vector<16x128xf32>
    %cst_5 = arith.constant -1.000000e+02 : f32
    %11 = vector.broadcast %cst_5 : f32 to vector<16x128xf32>
    %12 = arith.maximumf %10, %11 : vector<16x128xf32>
    %cst_6 = arith.constant 0.000000e+00 : f32
    %13 = vector.broadcast %cst_6 : f32 to vector<16x128xf32>
    %14 = arith.subf %13, %12 : vector<16x128xf32>
    %cst_7 = arith.constant 1.000000e+00 : f32
    %15 = vector.broadcast %cst_7 : f32 to vector<16x128xf32>
    %16 = arith.subf %15, %9 : vector<16x128xf32>
    %17 = arith.mulf %16, %16 : vector<16x128xf32>
    %18 = arith.mulf %17, %14 : vector<16x128xf32>
    %c0_8 = arith.constant 0 : index
    %c0_9 = arith.constant 0 : index
    %c0_10 = arith.constant 0 : index
    %19 = vector.load %arg4[%c0_8, %c0_9, %c0_10] : memref<1x8x128xf32, #tpu.memory_space<vmem>>, vector<1x8x128xf32>
    %20 = vector.shape_cast %19 : vector<1x8x128xf32> to vector<8x128xf32>
    %21 = vector.shape_cast %18 : vector<16x128xf32> to vector<2x8x128xf32>
    %cst_11 = arith.constant dense<0.000000e+00> : vector<8x128xf32>
    %22 = vector.multi_reduction <add>, %21, %cst_11 [0] : vector<2x8x128xf32> to vector<8x128xf32>
    %23 = arith.addf %20, %22 : vector<8x128xf32>
    %c0_12 = arith.constant 0 : index
    %c0_13 = arith.constant 0 : index
    %c0_14 = arith.constant 0 : index
    %24 = vector.load %arg4[%c0_12, %c0_13, %c0_14] : memref<1x8x128xf32, #tpu.memory_space<vmem>>, vector<1x8x128xf32>
    %25 = vector.shape_cast %24 : vector<1x8x128xf32> to vector<8x128xf32>
    %26 = vector.shape_cast %23 : vector<8x128xf32> to vector<1x8x128xf32>
    tpu.vector_store %arg4[%c0_12, %c0_13, %c0_14], %26 {strides = array<i32>} : memref<1x8x128xf32, #tpu.memory_space<vmem>>, vector<1x8x128xf32>,
    return
  }
  func.func @transform_0(%arg0: i32, %arg1: i32) -> (i32, i32) {
    %c1_i32 = arith.constant 1 : i32
    %0 = arith.muli %arg0, %c1_i32 : i32
    %1 = arith.addi %0, %arg1 : i32
    %c0_i32 = arith.constant 0 : i32
    %c0_i32_0 = arith.constant 0 : i32
    return %1, %c0_i32 : i32, i32
  }
  func.func @transform_1(%arg0: i32, %arg1: i32) -> (i32, i32) {
    %c1_i32 = arith.constant 1 : i32
    %0 = arith.muli %arg0, %c1_i32 : i32
    %1 = arith.addi %0, %arg1 : i32
    %c0_i32 = arith.constant 0 : i32
    %c0_i32_0 = arith.constant 0 : i32
    return %1, %c0_i32 : i32, i32
  }
  func.func @transform_2(%arg0: i32, %arg1: i32) -> (i32, i32, i32) {
    %c0_i32 = arith.constant 0 : i32
    %c0_i32_0 = arith.constant 0 : i32
    %c0_i32_1 = arith.constant 0 : i32
    return %arg0, %c0_i32, %c0_i32_0 : i32, i32, i32
  }
}

</mosaic_0001>

<bundles_post_ra>
// kernel: tpu_custom_call.1
= control target key start
LH: loop header
LB: loop body
LE: loop exit
PB: predicated region body
PF: predicated region fallthrough
CT: control target
= control target key end

     0   :  { %7 = vsyncpa [#allocation3], 0  ;;  %s224_s0 = inlined_call_operand.hbm [shape: f32[16,128], index: 0, kind: input, shape index: {}]   ;;  %s225_s1 = inlined_call_operand.hbm [shape: f32[16,128], index: 1, kind: input, shape index: {}]   ;;  %s226_s2 = inlined_call_operand.hbm [shape: f32[1,8,128], index: 2, kind: output, shape index: {}]  }
   0x1   :  { %8 = vsyncpa [#allocation6], 0 }
   0x2   :  { %9 = vsyncpa [#allocation4], 0  ;;  %s18_s11 = sshll.u32 %s224_s0, 4  ;;  %s195_s12 = smov [#allocation2]   ;;  %s19_s11 = int_to_ptr.hbm [resolvable:$true] %s18_s11 }
   0x3   :  { %s20_s13 = sshll.u32 %s195_s12, 4  ;;  %s35_s16 = sshll.u32 %s225_s1, 4  ;;  %s21_s13 = int_to_ptr.vmem [resolvable:$true] %s20_s13  ;;  %s36_s16 = int_to_ptr.hbm [resolvable:$true] %s35_s16 }
   0x4   :  { %s196_s17 = smov 128   ;;  %s197_s18 = smov 8  }
   0x5   :  { %26 = dma.hbm_to_vmem [thread:$0]  %s19_s11, 256, %s21_s13, [#allocation3], %s196_s17, %s196_s17, %s197_s18  }
   0x6   :  { %s198_s19 = smov [#allocation5]  }
   0x7   :  { %s37_s20 = sshll.u32 %s198_s19, 4  ;;  %s38_s20 = int_to_ptr.vmem [resolvable:$true] %s37_s20 }
   0x8   :  { %43 = dma.hbm_to_vmem [thread:$0]  %s36_s16, 256, %s38_s20, [#allocation6], %s196_s17, %s196_s17, %s197_s18  }
   0x9   :  { %189 = dma.done.wait [#allocation3], 256  }
   0xa   :  { %190 = vsyncadd [#allocation3], 4294967040 }
   0xb   :  { %191 = dma.done.wait [#allocation6], 256  }
   0xc   :  { %192 = vsyncadd [#allocation6], 4294967040  ;;  %v61_v0 = vld [vmem:[#allocation2] sm:$0xff]  ;;  %v62_v1 = vld [vmem:[#allocation2 + $0x8] sm:$0xff]  ;;  %s199_s0 = smov [#allocation7]   ;;  %s96_s23 = sshll.u32 %s226_s2, 4  ;;  %s97_s23 = int_to_ptr.hbm [resolvable:$true] %s96_s23 }
   0xd   :  { %v63_v2 = vld [vmem:[#allocation5] sm:$0xff]  ;;  %v64_v3 = vld [vmem:[#allocation5 + $0x8] sm:$0xff]  ;;  %v67_v4 = vsub.f32 1.0, %v61_v0  ;;  %v68_v5 = vsub.f32 1.0, %v62_v1  ;;  %s94_s1 = sshll.u32 %s199_s0, 4  ;;  %s95_s1 = int_to_ptr.vmem [resolvable:$true] %s94_s1 }
   0xe   :  { %vm65_vm0 = vcmp.ge.f32.partialorder %v63_v2, 0.5  ;;  %vm66_vm1 = vcmp.ge.f32.partialorder %v64_v3, 0.5 }
   0xf   :  { %v69_v6 = vsel %vm65_vm0, %v61_v0, %v67_v4  ;;  %v70_v7 = vsel %vm66_vm1, %v62_v1, %v68_v5 }
  0x10   :  { %113 = vlog2.f32 %v69_v6  ;;  %v79_v8 = vsub.f32 1.0, %v69_v6  ;;  %v80_v10 = vsub.f32 1.0, %v70_v7 }
  0x11   :  { %115 = vlog2.f32 %v70_v7 }
  0x12   :  { %v81_v15 = vmul.f32 %v79_v8, %v79_v8  ;;  %v82_v17 = vmul.f32 %v80_v10, %v80_v10 }
  0x16   :  { %v114_v9 = vpop.eup %113 }
  0x17   :  { %v116_v11 = vpop.eup %115  ;;  %v72_v12 = vmul.f32 0.6931472, %v114_v9 }
  0x18   :  { %v74_v13 = vmul.f32 0.6931472, %v116_v11 }
  0x19   :  { %v75_v14 = vmax.f32 %v72_v12, -100.0 }
  0x1a   :  { %v76_v16 = vmax.f32 %v74_v13, -100.0 }
  0x1b   :  { %v77_v18 = vsub.f32 0.0, %v75_v14 }
  0x1c   :  { %v78_v19 = vsub.f32 0.0, %v76_v16 }
  0x1d   :  { %v83_v20 = vmul.f32 %v81_v15, %v77_v18 }
  0x1e   :  { %v84_v21 = vmul.f32 %v82_v17, %v78_v19 }
  0x20   :  { %v86_v22 = vadd.f32 %v84_v21, %v83_v20 }
  0x22   :  { %88 = vst [vmem:[#allocation7] sm:$0xff] %v86_v22 }
  0x23   :  { %99 = dma.vmem_to_hbm [thread:$0]  %s95_s1, 128, %s97_s23, [#allocation4]  }
  0x24   :  { %193 = dma.done.wait [#allocation4], 128  }
  0x25   :  { %194 = vsyncadd [#allocation4], 4294967168 }
  0x26   :  { %104 = vsyncpa [#allocation3], 1 }
  0x27   :  { %105 = vsyncpa [#allocation6], 1 }
  0x28   :  { %106 = vsyncpa [#allocation4], 1 }

</bundles_post_ra>
